<compile_context>
chip_gen: v6e
topology: v6e:2x2x1
jax: 0.10.0
libtpu: 0.0.40
codegen_flags: <defaults>
</compile_context>

<pallas_src>
import jax
import jax.numpy as jnp
from jax.experimental import pallas as pl
from jax.experimental.pallas import tpu as pltpu


def _encoder_kernel(x_ref, w1_ref, b1_ref, w2_ref, b2_ref, o_ref):
    # Layer 1: x @ W1 + b1 -> ReLU  (bf16 MXU matmul, f32 accumulation).
    x = x_ref[...].astype(w1_ref.dtype)
    h = jnp.dot(x, w1_ref[...], preferred_element_type=jnp.float32)
    h = jnp.maximum(h + b1_ref[...], 0.0)
    # Layer 2: h @ W2 + b2  (hidden activation never leaves VMEM/vregs).
    y = jnp.dot(h.astype(w2_ref.dtype), w2_ref[...],
                preferred_element_type=jnp.float32)
    o_ref[...] = (y + b2_ref[...]).astype(o_ref.dtype)


def cifar10_ae_encoder(x, w1, b1, w2, b2, *, block_b=None):
    """x: [B, 512] -> [B, 256].  w1: [512,256], w2: [256,256] (in, out).

    Pass x (and receive the output) in bfloat16 for best HBM efficiency;
    any float dtype works -- the kernel casts to the weight dtype for the MXU.
    """
    B, D_in = x.shape
    D_hid = w1.shape[1]
    D_out = w2.shape[1]
    assert w1.shape == (D_in, D_hid)
    assert w2.shape == (D_hid, D_out)
    assert b1.size == D_hid, "b1 length must equal hidden dim"
    assert b2.size == D_out, "b2 length must equal output dim"

    b1 = b1.reshape(1, D_hid).astype(jnp.float32)
    b2 = b2.reshape(1, D_out).astype(jnp.float32)

    # Batch tile: multiple of 256 (full 256-wide MXU M-passes on v6e/v7x,
    # lane-dense 2x128 stores), capped at 1024, and sized so the grid has at
    # least 2 steps whenever B allows it (v7x megacore splits the batch).
    if block_b is None:
        block_b = min(1024, max(256, (B // 2) // 256 * 256))
    else:
        block_b = max(256, -(-block_b // 256) * 256)  # round up to mult of 256

    def _bytes(a):
        return a.size * a.dtype.itemsize

    cost = pl.CostEstimate(
        flops=2 * B * D_in * D_hid + 2 * B * D_hid * D_out,
        transcendentals=0,
        bytes_accessed=(_bytes(x) + _bytes(w1) + _bytes(b1) + _bytes(w2)
                        + _bytes(b2) + B * D_out * x.dtype.itemsize),
    )

    if B <= block_b:
        # Grid would degenerate to a single step: skip the pipeline machinery
        # entirely (no double-buffering, no per-step overhead).
        return pl.pallas_call(
            _encoder_kernel,
            out_shape=jax.ShapeDtypeStruct((B, D_out), x.dtype),
            in_specs=[pl.BlockSpec(memory_space=pltpu.MemorySpace.VMEM)] * 5,
            out_specs=pl.BlockSpec(memory_space=pltpu.MemorySpace.VMEM),
            cost_estimate=cost,
        )(x, w1, b1, w2, b2)

    # Gridded path: tile rows (ragged last block is masked by Pallas -- no
    # padding / re-slicing in HBM).  Weights/biases are VMEM-resident across
    # steps via constant index_maps; batch axis is "parallel" for megacore.
    grid = (pl.cdiv(B, block_b),)
    return pl.pallas_call(
        _encoder_kernel,
        out_shape=jax.ShapeDtypeStruct((B, D_out), x.dtype),
        grid_spec=pltpu.PrefetchScalarGridSpec(
            num_scalar_prefetch=0,
            grid=grid,
            in_specs=[
                pl.BlockSpec((block_b, D_in), lambda i: (i, 0)),
                pl.BlockSpec((D_in, D_hid),   lambda i: (0, 0)),
                pl.BlockSpec((1, D_hid),      lambda i: (0, 0)),
                pl.BlockSpec((D_hid, D_out),  lambda i: (0, 0)),
                pl.BlockSpec((1, D_out),      lambda i: (0, 0)),
            ],
            out_specs=pl.BlockSpec((block_b, D_out), lambda i: (i, 0)),
        ),
        compiler_params=pltpu.CompilerParams(
            dimension_semantics=("parallel",),
        ),
        cost_estimate=cost,
    )(x, w1, b1, w2, b2)


def encoder_ref(x, w1, b1, w2, b2):
    """Plain-JAX reference mirroring the kernel's mixed precision."""
    h = jnp.dot(x.astype(w1.dtype), w1, preferred_element_type=jnp.float32)
    h = jnp.maximum(h + b1.reshape(1, -1).astype(jnp.float32), 0.0)
    y = jnp.dot(h.astype(w2.dtype), w2, preferred_element_type=jnp.float32)
    return (y + b2.reshape(1, -1).astype(jnp.float32)).astype(x.dtype)


def init_params(key):
    """nn.Linear-like init (U[-1/sqrt(fan_in), +]); weights stored in bf16."""
    k1, k2, k3, k4 = jax.random.split(key, 4)
    bound1 = 1.0 / jnp.sqrt(512.0)
    bound2 = 1.0 / jnp.sqrt(256.0)
    w1 = jax.random.uniform(k1, (512, 256), jnp.float32, -bound1, bound1)
    b1 = jax.random.uniform(k2, (256,),     jnp.float32, -bound1, bound1)
    w2 = jax.random.uniform(k3, (256, 256), jnp.float32, -bound2, bound2)
    b2 = jax.random.uniform(k4, (256,),     jnp.float32, -bound2, bound2)
    # bf16 weights halve the HBM weight traffic; biases stay f32 (added post-
    # accumulation).  TODO(synk): optional fp8 weight path for v7x if the AE
    # tolerates the quantization.
    return w1.astype(jnp.bfloat16), b1, w2.astype(jnp.bfloat16), b2


if __name__ == "__main__":
    key = jax.random.PRNGKey(0)
    kx, kp = jax.random.split(key)
    w1, b1, w2, b2 = init_params(kp)

    # ---- small batch -> gridless path (bf16 activations in/out) ----
    B_small = 8
    x_small = jax.random.normal(kx, (B_small, 512), jnp.float32).astype(
        jnp.bfloat16)
    out_small = jax.block_until_ready(
        cifar10_ae_encoder(x_small, w1, b1, w2, b2))
    ref_small = encoder_ref(x_small, w1, b1, w2, b2)
    assert out_small.shape == (B_small, 256)
    assert out_small.dtype == jnp.bfloat16
    assert jnp.allclose(out_small.astype(jnp.float32),
                        ref_small.astype(jnp.float32), atol=2e-2, rtol=2e-2)

    # ---- medium batch -> gridded, parallel path with ragged last block ----
    B_med = 384  # block_b=256 -> 2 grid steps, second block masked (128 rows)
    x_med = jax.random.normal(kx, (B_med, 512), jnp.float32).astype(
        jnp.bfloat16)
    out_med = jax.block_until_ready(
        cifar10_ae_encoder(x_med, w1, b1, w2, b2))
    ref_med = encoder_ref(x_med, w1, b1, w2, b2)
    assert out_med.shape == (B_med, 256)
    assert out_med.dtype == jnp.bfloat16
    assert jnp.allclose(out_med.astype(jnp.float32),
                        ref_med.astype(jnp.float32), atol=2e-2, rtol=2e-2)

    print("KERNEL_OK")
</pallas_src>

<mosaic_0001>
module attributes {stable_mosaic.version = 11 : i64} {
  func.func @_encoder_kernel(%arg0: memref<8x512xbf16, #tpu.memory_space<vmem>>, %arg1: memref<512x256xbf16, #tpu.memory_space<vmem>>, %arg2: memref<1x256xf32, #tpu.memory_space<vmem>>, %arg3: memref<256x256xbf16, #tpu.memory_space<vmem>>, %arg4: memref<1x256xf32, #tpu.memory_space<vmem>>, %arg5: memref<8x256xbf16, #tpu.memory_space<vmem>>) attributes {dimension_semantics = [], scalar_prefetch = 0 : i64, scratch_operands = 0 : i64, tpu.core_type = #tpu.core_type<tc>} {
    %c0 = arith.constant 0 : index
    %c0_0 = arith.constant 0 : index
    %0 = vector.load %arg0[%c0, %c0_0] : memref<8x512xbf16, #tpu.memory_space<vmem>>, vector<8x512xbf16>
    %c0_1 = arith.constant 0 : index
    %c0_2 = arith.constant 0 : index
    %1 = vector.load %arg1[%c0_1, %c0_2] : memref<512x256xbf16, #tpu.memory_space<vmem>>, vector<512x256xbf16>
    %cst = arith.constant dense<0.000000e+00> : vector<8x256xf32>
    %2 = tpu.matmul %0, %1, %cst {dimension_numbers = #tpu.dot_dimension_numbers<[1], [0], [0], [1], [0, 0, 1, 1], [], []>} : vector<8x512xbf16>, vector<512x256xbf16>, vector<8x256xf32> -> vector<8x256xf32>
    %c0_3 = arith.constant 0 : index
    %c0_4 = arith.constant 0 : index
    %3 = vector.load %arg2[%c0_3, %c0_4] : memref<1x256xf32, #tpu.memory_space<vmem>>, vector<1x256xf32>
    %4 = vector.broadcast %3 : vector<1x256xf32> to vector<8x256xf32>
    %5 = arith.addf %2, %4 : vector<8x256xf32>
    %cst_5 = arith.constant 0.000000e+00 : f32
    %6 = vector.broadcast %cst_5 : f32 to vector<8x256xf32>
    %7 = arith.maximumf %5, %6 : vector<8x256xf32>
    %8 = arith.truncf %7 : vector<8x256xf32> to vector<8x256xbf16>
    %c0_6 = arith.constant 0 : index
    %c0_7 = arith.constant 0 : index
    %9 = vector.load %arg3[%c0_6, %c0_7] : memref<256x256xbf16, #tpu.memory_space<vmem>>, vector<256x256xbf16>
    %cst_8 = arith.constant dense<0.000000e+00> : vector<8x256xf32>
    %10 = tpu.matmul %8, %9, %cst_8 {dimension_numbers = #tpu.dot_dimension_numbers<[1], [0], [0], [1], [0, 0, 1, 1], [], []>} : vector<8x256xbf16>, vector<256x256xbf16>, vector<8x256xf32> -> vector<8x256xf32>
    %c0_9 = arith.constant 0 : index
    %c0_10 = arith.constant 0 : index
    %11 = vector.load %arg4[%c0_9, %c0_10] : memref<1x256xf32, #tpu.memory_space<vmem>>, vector<1x256xf32>
    %12 = vector.broadcast %11 : vector<1x256xf32> to vector<8x256xf32>
    %13 = arith.addf %10, %12 : vector<8x256xf32>
    %14 = arith.truncf %13 : vector<8x256xf32> to vector<8x256xbf16>
    %c0_11 = arith.constant 0 : index
    %c0_12 = arith.constant 0 : index
    %15 = vector.load %arg5[%c0_11, %c0_12] : memref<8x256xbf16, #tpu.memory_space<vmem>>, vector<8x256xbf16>
    tpu.vector_store %arg5[%c0_11, %c0_12], %14 {strides = array<i32>} : memref<8x256xbf16, #tpu.memory_space<vmem>>, vector<8x256xbf16>,
    return
  }
}

</mosaic_0001>

<bundles_post_ra>
// kernel: tpu_custom_call.1
= control target key start
LH: loop header
LB: loop body
LE: loop exit
PB: predicated region body
PF: predicated region fallthrough
CT: control target
= control target key end

     0   :  { %10 = vsyncpa [#allocation3], 0  ;;  %s1224_s0 = inlined_call_operand.hbm [shape: bf16[8,512], index: 0, kind: input, shape index: {}]   ;;  %s1225_s1 = inlined_call_operand.hbm [shape: bf16[512,256], index: 1, kind: input, shape index: {}]   ;;  %s1226_s2 = inlined_call_operand.vmem [shape: f32[1,256], index: 2, kind: input, shape index: {}]   ;;  %s1227_s3 = inlined_call_operand.hbm [shape: bf16[256,256], index: 3, kind: input, shape index: {}]   ;;  %s1228_s4 = inlined_call_operand.vmem [shape: f32[1,256], index: 4, kind: input, shape index: {}]   ;;  %s1229_s5 = inlined_call_operand.hbm [shape: bf16[8,256], index: 5, kind: output, shape index: {}]  }
   0x1   :  { %11 = vsyncpa [#allocation6], 0 }
   0x2   :  { %12 = vsyncpa [#allocation4], 0  ;;  %s1170_s18 = smov [#allocation5]  }
   0x3   :  { %s28_s19 = sshll.u32 %s1170_s18, 4  ;;  %s29_s19 = int_to_ptr.vmem [resolvable:$true] %s28_s19 }
   0x4   :  { %s1092_s20 = scalar_lea.vmem %s29_s19, 8192  ;;  %p1097_p1 = scmp.lt.s32.totalorder %s29_s19, %s29_s19 }
   0x5   :  { %p1093_p0 = scmp.ne.s32.totalorder %s29_s19, %s1092_s20  ;;  %p1098_p2 = scmp.lt.s32.totalorder %s1092_s20, %s1092_s20 }
   0x7   :  { %p1099_p3 = por %p1098_p2, %p1097_p1 }
   0x9   :  { %p1100_p4 = pnand %p1099_p3, %p1093_p0 }
   0xb   :  { %1103 = shalt.err (!%p1100_p4)
}
   0xc   :  { %s1171_s21 = smov 128   ;;  %s1172_s22 = smov 8  }
   0xd   :  { %34 = dma.hbm_to_vmem [thread:$0]  %s1225_s1, 8192, %s29_s19, [#allocation6], %s1171_s21, %s1171_s21, %s1172_s22  }
   0xe   :  { %s1173_s25 = smov [#allocation2]   ;;  %s1174_s27 = smov [#allocation7]  }
   0xf   :  { %s19_s26 = sshll.u32 %s1173_s25, 4  ;;  %s42_s28 = sshll.u32 %s1174_s27, 4  ;;  %s20_s26 = int_to_ptr.vmem [resolvable:$true] %s19_s26  ;;  %s43_s28 = int_to_ptr.vmem [resolvable:$true] %s42_s28 }
  0x10   :  { %s1112_s29 = scalar_lea.vmem %s20_s26, 256  ;;  %p1117_p6 = scmp.lt.s32.totalorder %s20_s26, %s20_s26 }
  0x11   :  { %p1113_p5 = scmp.ne.s32.totalorder %s20_s26, %s1112_s29  ;;  %p1118_p7 = scmp.lt.s32.totalorder %s1112_s29, %s1112_s29 }
  0x13   :  { %p1119_p8 = por %p1118_p7, %p1117_p6 }
  0x15   :  { %p1120_p9 = pnand %p1119_p8, %p1113_p5 }
  0x17   :  { %1123 = shalt.err (!%p1120_p9)
}
  0x18   :  { %22 = dma.hbm_to_vmem [thread:$0]  %s1224_s0, 256, %s20_s26, [#allocation3]  }
  0x19   :  { %s1132_s7 = scalar_lea.vmem %s43_s28, 4096  ;;  %p1137_p11 = scmp.lt.s32.totalorder %s43_s28, %s43_s28 }
  0x1a   :  { %p1133_p10 = scmp.ne.s32.totalorder %s43_s28, %s1132_s7  ;;  %p1138_p12 = scmp.lt.s32.totalorder %s1132_s7, %s1132_s7 }
  0x1c   :  { %p1139_p13 = por %p1138_p12, %p1137_p11 }
  0x1e   :  { %p1140_p0 = pnand %p1139_p13, %p1133_p10 }
  0x20   :  { %1143 = shalt.err (!%p1140_p0)
}
  0x21   :  { %48 = dma.hbm_to_vmem [thread:$0]  %s1227_s3, 4096, %s43_s28, [#allocation6], %s1171_s21, %s1171_s21, %s1172_s22  }
  0x22   :  { %1164 = dma.done.wait [#allocation3], 256  }
  0x23   :  { %1165 = vsyncadd [#allocation3], 4294967040 }
  0x24   :  { %1166 = dma.done.wait [#allocation6], 12288  }
  0x25   :  { %1167 = vsyncadd [#allocation6], 4294955008  ;;  %v936_v0 = vld [vmem:[#allocation5 + $0x74] ss:$8 sps:$4 sm:$0xff]   ;;  %v940_v2 = vld [vmem:[#allocation5 + $0x70] ss:$8 sps:$4 sm:$0xff]  }
  0x26   :  { %v938_v1 = vld [vmem:[#allocation5 + $0x174] ss:$8 sps:$4 sm:$0xff]   ;;  %472 = vmatprep.subr.bf16.mxu0 %v936_v0  ;;  %v941_v3 = vld [vmem:[#allocation5 + $0x170] ss:$8 sps:$4 sm:$0xff]   ;;  %v942_v4 = vld [vmem:[#allocation5 + $0x64] ss:$8 sps:$4 sm:$0xff]  }
  0x27   :  { %513 = vmatprep.subr.bf16.mxu1 %v938_v1  ;;  %473 = vmatpush1.bf16.msra.mxu0 %v940_v2  ;;  %v944_v5 = vld [vmem:[#allocation5 + $0x164] ss:$8 sps:$4 sm:$0xff]   ;;  %v946_v6 = vld [vmem:[#allocation5 + $0x60] ss:$8 sps:$4 sm:$0xff]   ;;  %v948_v8 = vld [vmem:[#allocation5 + $0x54] ss:$8 sps:$4 sm:$0xff]  }
  0x28   :  { %514 = vmatpush1.bf16.msra.mxu1 %v941_v3  ;;  %474 = vmatprep.subr.bf16.mxu0 %v942_v4  ;;  %v947_v7 = vld [vmem:[#allocation5 + $0x160] ss:$8 sps:$4 sm:$0xff]   ;;  %v950_v9 = vld [vmem:[#allocation5 + $0x154] ss:$8 sps:$4 sm:$0xff]   ;;  %v952_v10 = vld [vmem:[#allocation5 + $0x50] ss:$8 sps:$4 sm:$0xff]  }
  0x29   :  { %515 = vmatprep.subr.bf16.mxu1 %v944_v5  ;;  %v953_v11 = vld [vmem:[#allocation5 + $0x150] ss:$8 sps:$4 sm:$0xff]   ;;  %v954_v12 = vld [vmem:[#allocation5 + $0x44] ss:$8 sps:$4 sm:$0xff]   ;;  %v958_v14 = vld [vmem:[#allocation5 + $0x40] ss:$8 sps:$4 sm:$0xff]  }
  0x2a   :  { %v956_v13 = vld [vmem:[#allocation5 + $0x144] ss:$8 sps:$4 sm:$0xff]   ;;  %v959_v15 = vld [vmem:[#allocation5 + $0x140] ss:$8 sps:$4 sm:$0xff]   ;;  %v960_v16 = vld [vmem:[#allocation5 + $0x34] ss:$8 sps:$4 sm:$0xff]  }
  0x2b   :  { %475 = vmatpush1.bf16.msra.mxu0 %v946_v6  ;;  %v962_v17 = vld [vmem:[#allocation5 + $0x134] ss:$8 sps:$4 sm:$0xff]   ;;  %v964_v18 = vld [vmem:[#allocation5 + $0x30] ss:$8 sps:$4 sm:$0xff]   ;;  %v966_v20 = vld [vmem:[#allocation5 + $0x24] ss:$8 sps:$4 sm:$0xff]  }
  0x2c   :  { %516 = vmatpush1.bf16.msra.mxu1 %v947_v7  ;;  %476 = vmatprep.subr.bf16.mxu0 %v948_v8  ;;  %v965_v19 = vld [vmem:[#allocation5 + $0x130] ss:$8 sps:$4 sm:$0xff]   ;;  %v968_v21 = vld [vmem:[#allocation5 + $0x124] ss:$8 sps:$4 sm:$0xff]   ;;  %v970_v22 = vld [vmem:[#allocation5 + $0x20] ss:$8 sps:$4 sm:$0xff]  }
  0x2d   :  { %517 = vmatprep.subr.bf16.mxu1 %v950_v9  ;;  %v971_v23 = vld [vmem:[#allocation5 + $0x120] ss:$8 sps:$4 sm:$0xff]   ;;  %v972_v24 = vld [vmem:[#allocation5 + $0x14] ss:$8 sps:$4 sm:$0xff]   ;;  %v976_v26 = vld [vmem:[#allocation5 + $0x10] ss:$8 sps:$4 sm:$0xff]  }
  0x2e   :  { %v974_v25 = vld [vmem:[#allocation5 + $0x114] ss:$8 sps:$4 sm:$0xff]   ;;  %v977_v27 = vld [vmem:[#allocation5 + $0x110] ss:$8 sps:$4 sm:$0xff]   ;;  %v978_v28 = vld [vmem:[#allocation5 + $0x4] ss:$8 sps:$4 sm:$0xff]  }
  0x2f   :  { %477 = vmatpush1.bf16.msra.mxu0 %v952_v10  ;;  %v980_v29 = vld [vmem:[#allocation5 + $0x104] ss:$8 sps:$4 sm:$0xff]   ;;  %v982_v30 = vld [vmem:[#allocation5] ss:$8 sps:$4 sm:$0xff]   ;;  %v984_v32 = vld [vmem:[#allocation5 + $0xf4] ss:$8 sps:$4 sm:$0xff]  }
  0x30   :  { %518 = vmatpush1.bf16.msra.mxu1 %v953_v11  ;;  %478 = vmatprep.subr.bf16.mxu0 %v954_v12  ;;  %v983_v31 = vld [vmem:[#allocation5 + $0x100] ss:$8 sps:$4 sm:$0xff]   ;;  %v986_v33 = vld [vmem:[#allocation5 + $0x1f4] ss:$8 sps:$4 sm:$0xff]   ;;  %v988_v34 = vld [vmem:[#allocation5 + $0xf0] ss:$8 sps:$4 sm:$0xff]  }
  0x31   :  { %519 = vmatprep.subr.bf16.mxu1 %v956_v13  ;;  %v989_v35 = vld [vmem:[#allocation5 + $0x1f0] ss:$8 sps:$4 sm:$0xff]   ;;  %v990_v36 = vld [vmem:[#allocation5 + $0xe4] ss:$8 sps:$4 sm:$0xff]   ;;  %v994_v38 = vld [vmem:[#allocation5 + $0xe0] ss:$8 sps:$4 sm:$0xff]  }
  0x32   :  { %v992_v37 = vld [vmem:[#allocation5 + $0x1e4] ss:$8 sps:$4 sm:$0xff]   ;;  %v995_v39 = vld [vmem:[#allocation5 + $0x1e0] ss:$8 sps:$4 sm:$0xff]   ;;  %v996_v40 = vld [vmem:[#allocation5 + $0xd4] ss:$8 sps:$4 sm:$0xff]  }
  0x33   :  { %479 = vmatpush1.bf16.msra.mxu0 %v958_v14  ;;  %v998_v41 = vld [vmem:[#allocation5 + $0x1d4] ss:$8 sps:$4 sm:$0xff]   ;;  %v1000_v42 = vld [vmem:[#allocation5 + $0xd0] ss:$8 sps:$4 sm:$0xff]   ;;  %v1002_v44 = vld [vmem:[#allocation5 + $0xc4] ss:$8 sps:$4 sm:$0xff]  }
  0x34   :  { %520 = vmatpush1.bf16.msra.mxu1 %v959_v15  ;;  %480 = vmatprep.subr.bf16.mxu0 %v960_v16  ;;  %v1001_v43 = vld [vmem:[#allocation5 + $0x1d0] ss:$8 sps:$4 sm:$0xff]   ;;  %v1004_v45 = vld [vmem:[#allocation5 + $0x1c4] ss:$8 sps:$4 sm:$0xff]   ;;  %v1006_v49 = vld [vmem:[#allocation5 + $0xc0] ss:$8 sps:$4 sm:$0xff]  }
  0x35   :  { %521 = vmatprep.subr.bf16.mxu1 %v962_v17  ;;  %v60_v46 = vld [vmem:[#allocation2] sm:$0xff]  ;;  %v61_v48 = vld [vmem:[#allocation2 + $0x8] sm:$0xff]  ;;  %v1007_v50 = vld [vmem:[#allocation5 + $0x1c0] ss:$8 sps:$4 sm:$0xff]   ;;  %s1175_s10 = smov [#allocation8]  }
  0x36   :  { %v829_v47 = vcombine.high %v60_v46, %v60_v46  ;;  %v831_v51 = vcombine.high %v61_v48, %v61_v48  ;;  %v1008_v52 = vld [vmem:[#allocation5 + $0xb4] ss:$8 sps:$4 sm:$0xff]   ;;  %v1012_v54 = vld [vmem:[#allocation5 + $0xb0] ss:$8 sps:$4 sm:$0xff]   ;;  %v1014_v56 = vld [vmem:[#allocation5 + $0xa4] ss:$8 sps:$4 sm:$0xff]   ;;  %v828_v5 = vcombine.low %v60_v46, %v60_v46  ;;  %v830_v6 = vcombine.low %v61_v48, %v61_v48 }
  0x37   :  { %481 = vmatpush1.bf16.msra.mxu0 %v964_v18  ;;  %v1010_v53 = vld [vmem:[#allocation5 + $0x1b4] ss:$8 sps:$4 sm:$0xff]   ;;  %v1013_v55 = vld [vmem:[#allocation5 + $0x1b0] ss:$8 sps:$4 sm:$0xff]   ;;  %v1016_v57 = vld [vmem:[#allocation5 + $0x1a4] ss:$8 sps:$4 sm:$0xff]  }
  0x38   :  { %522 = vmatpush1.bf16.msra.mxu1 %v965_v19  ;;  %482 = vmatprep.subr.bf16.mxu0 %v966_v20  ;;  %v1018_v58 = vld [vmem:[#allocation5 + $0xa0] ss:$8 sps:$4 sm:$0xff]   ;;  %v1020_v60 = vld [vmem:[#allocation5 + $0x94] ss:$8 sps:$4 sm:$0xff]   ;;  %v1024_v62 = vld [vmem:[#allocation5 + $0x90] ss:$8 sps:$4 sm:$0xff]  }
  0x39   :  { %523 = vmatprep.subr.bf16.mxu1 %v968_v21  ;;  %504 = vmatprep.mubr.bf16.mxu0 %v829_v47  ;;  %v1019_v59 = vld [vmem:[#allocation5 + $0x1a0] ss:$8 sps:$4 sm:$0xff]   ;;  %v1022_v61 = vld [vmem:[#allocation5 + $0x194] ss:$8 sps:$4 sm:$0xff]   ;;  %v1025_v63 = vld [vmem:[#allocation5 + $0x190] ss:$8 sps:$4 sm:$0xff]  }
  0x3a   :  { %545 = vmatprep.mubr.bf16.mxu1 %v831_v51  ;;  %v1026_v0 = vld [vmem:[#allocation5 + $0x84] ss:$8 sps:$4 sm:$0xff]   ;;  %v1030_v2 = vld [vmem:[#allocation5 + $0x80] ss:$8 sps:$4 sm:$0xff]   ;;  %v1038_v4 = vld [vmem:[#allocation7 + $0x74] ss:$8 sps:$4 sm:$0xff]  }
  0x3b   :  { %483 = vmatpush1.bf16.msra.mxu0 %v970_v22  ;;  %v1028_v1 = vld [vmem:[#allocation5 + $0x184] ss:$8 sps:$4 sm:$0xff]   ;;  %v1031_v3 = vld [vmem:[#allocation5 + $0x180] ss:$8 sps:$4 sm:$0xff]   ;;  %v1036_v7 = vld [vmem:[#allocation7 + $0x70] ss:$8 sps:$4 sm:$0xff]  }
  0x3c   :  { %524 = vmatpush1.bf16.msra.mxu1 %v971_v23  ;;  %484 = vmatprep.subr.bf16.mxu0 %v972_v24  ;;  %v1041_v8 = vld [vmem:[#allocation7 + $0x64] ss:$8 sps:$4 sm:$0xff]   ;;  %v1039_v9 = vld [vmem:[#allocation7 + $0x60] ss:$8 sps:$4 sm:$0xff]   ;;  %v1044_v10 = vld [vmem:[#allocation7 + $0x54] ss:$8 sps:$4 sm:$0xff]  }
  0x3d   :  { %525 = vmatprep.subr.bf16.mxu1 %v974_v25  ;;  %v1042_v11 = vld [vmem:[#allocation7 + $0x50] ss:$8 sps:$4 sm:$0xff]   ;;  %v1047_v12 = vld [vmem:[#allocation7 + $0x44] ss:$8 sps:$4 sm:$0xff]   ;;  %v1045_v13 = vld [vmem:[#allocation7 + $0x40] ss:$8 sps:$4 sm:$0xff]  }
  0x3e   :  { %v1050_v14 = vld [vmem:[#allocation7 + $0x34] ss:$8 sps:$4 sm:$0xff]   ;;  %v1048_v15 = vld [vmem:[#allocation7 + $0x30] ss:$8 sps:$4 sm:$0xff]   ;;  %v1053_v16 = vld [vmem:[#allocation7 + $0x24] ss:$8 sps:$4 sm:$0xff]  }
  0x3f   :  { %485 = vmatpush1.bf16.msra.mxu0 %v976_v26  ;;  %v1051_v17 = vld [vmem:[#allocation7 + $0x20] ss:$8 sps:$4 sm:$0xff]   ;;  %v1056_v18 = vld [vmem:[#allocation7 + $0x14] ss:$8 sps:$4 sm:$0xff]   ;;  %v1054_v19 = vld [vmem:[#allocation7 + $0x10] ss:$8 sps:$4 sm:$0xff]  }
  0x40   :  { %526 = vmatpush1.bf16.msra.mxu1 %v977_v27  ;;  %486 = vmatprep.subr.bf16.mxu0 %v978_v28  ;;  %v1059_v20 = vld [vmem:[#allocation7 + $0x4] ss:$8 sps:$4 sm:$0xff]   ;;  %v1057_v21 = vld [vmem:[#allocation7] ss:$8 sps:$4 sm:$0xff]   ;;  %v1062_v22 = vld [vmem:[#allocation7 + $0xf4] ss:$8 sps:$4 sm:$0xff]  }
  0x41   :  { %527 = vmatprep.subr.bf16.mxu1 %v980_v29  ;;  %v1060_v23 = vld [vmem:[#allocation7 + $0xf0] ss:$8 sps:$4 sm:$0xff]   ;;  %v1065_v24 = vld [vmem:[#allocation7 + $0xe4] ss:$8 sps:$4 sm:$0xff]   ;;  %v1063_v25 = vld [vmem:[#allocation7 + $0xe0] ss:$8 sps:$4 sm:$0xff]  }
  0x42   :  { %v1068_v26 = vld [vmem:[#allocation7 + $0xd4] ss:$8 sps:$4 sm:$0xff]   ;;  %v1066_v27 = vld [vmem:[#allocation7 + $0xd0] ss:$8 sps:$4 sm:$0xff]   ;;  %v1071_v28 = vld [vmem:[#allocation7 + $0xc4] ss:$8 sps:$4 sm:$0xff]  }
  0x43   :  { %487 = vmatpush1.bf16.msra.mxu0 %v982_v30  ;;  %v1069_v29 = vld [vmem:[#allocation7 + $0xc0] ss:$8 sps:$4 sm:$0xff]   ;;  %v1074_v30 = vld [vmem:[#allocation7 + $0xb4] ss:$8 sps:$4 sm:$0xff]   ;;  %s818_s11 = sshll.u32 %s1175_s10, 4  ;;  %s819_s11 = int_to_ptr.vmem [resolvable:$true] %s818_s11 }
  0x44   :  { %528 = vmatpush1.bf16.msra.mxu1 %v983_v31  ;;  %488 = vmatprep.subr.bf16.mxu0 %v984_v32  ;;  %v1072_v31 = vld [vmem:[#allocation7 + $0xb0] ss:$8 sps:$4 sm:$0xff]   ;;  %v1077_v32 = vld [vmem:[#allocation7 + $0xa4] ss:$8 sps:$4 sm:$0xff]   ;;  %s1144_s12 = scalar_lea.vmem %s819_s11, 128  ;;  %p1149_p2 = scmp.lt.s32.totalorder %s819_s11, %s819_s11 }
  0x45   :  { %529 = vmatprep.subr.bf16.mxu1 %v986_v33  ;;  %v1075_v33 = vld [vmem:[#allocation7 + $0xa0] ss:$8 sps:$4 sm:$0xff]   ;;  %p1145_p1 = scmp.ne.s32.totalorder %s819_s11, %s1144_s12  ;;  %p1150_p3 = scmp.lt.s32.totalorder %s1144_s12, %s1144_s12 }
  0x47   :  { %489 = vmatpush2.bf16.msra.mxu0 %v988_v34  ;;  %v1080_v34 = vld [vmem:[#allocation7 + $0x94] ss:$8 sps:$4 sm:$0xff]   ;;  %p1151_p4 = por %p1150_p3, %p1149_p2 }
  0x48   :  { %530 = vmatpush2.bf16.msra.mxu1 %v989_v35  ;;  %490 = vmatprep.subr.bf16.mxu0 %v990_v36  ;;  %v1078_v35 = vld [vmem:[#allocation7 + $0x90] ss:$8 sps:$4 sm:$0xff]   ;;  %v1083_v36 = vld [vmem:[#allocation7 + $0x84] ss:$8 sps:$4 sm:$0xff]  }
  0x49   :  { %531 = vmatprep.subr.bf16.mxu1 %v992_v37  ;;  %v1081_v37 = vld [vmem:[#allocation7 + $0x80] ss:$8 sps:$4 sm:$0xff]   ;;  %p1152_p5 = pnand %p1151_p4, %p1145_p1 }
  0x4b   :  { %491 = vmatpush2.bf16.msra.mxu0 %v994_v38  ;;  %v128_v38 = vlaneseq }
  0x4c   :  { %532 = vmatpush2.bf16.msra.mxu1 %v995_v39  ;;  %492 = vmatprep.subr.bf16.mxu0 %v996_v40 }
  0x4d   :  { %533 = vmatprep.subr.bf16.mxu1 %v998_v41  ;;  %v129_v39 = vshrl.u32 %v128_v38, 7  ;;  %v126_v41 = vld [vmem:[%s1226_s2] sm:$0x3] }
  0x4f   :  { %493 = vmatpush2.bf16.msra.mxu0 %v1000_v42  ;;  %v130_v40 = vsub.s32 0, %v129_v39  ;;  %v134_v42 = vsub.s32 1, %v129_v39 }
  0x50   :  { %534 = vmatpush2.bf16.msra.mxu1 %v1001_v43  ;;  %494 = vmatprep.subr.bf16.mxu0 %v1002_v44 }
  0x51   :  { %535 = vmatprep.subr.bf16.mxu1 %v1004_v45  ;;  %v131_v43 = vrot.slane %v126_v41, %v130_v40  ;;  %v135_v44 = vrot.slane %v126_v41, %v134_v42 }
  0x53   :  { %495 = vmatpush2.bf16.msra.mxu0 %v1006_v49 }
  0x54   :  { %536 = vmatpush2.bf16.msra.mxu1 %v1007_v50  ;;  %496 = vmatprep.subr.bf16.mxu0 %v1008_v52 }
  0x55   :  { %537 = vmatprep.subr.bf16.mxu1 %v1010_v53 }
  0x57   :  { %497 = vmatpush2.bf16.msra.mxu0 %v1012_v54 }
  0x58   :  { %538 = vmatpush2.bf16.msra.mxu1 %v1013_v55  ;;  %498 = vmatprep.subr.bf16.mxu0 %v1014_v56 }
  0x59   :  { %539 = vmatprep.subr.bf16.mxu1 %v1016_v57 }
  0x5b   :  { %499 = vmatpush2.bf16.msra.mxu0 %v1018_v58 }
  0x5c   :  { %540 = vmatpush2.bf16.msra.mxu1 %v1019_v59  ;;  %500 = vmatprep.subr.bf16.mxu0 %v1020_v60 }
  0x5d   :  { %541 = vmatprep.subr.bf16.mxu1 %v1022_v61  ;;  %v590_v61 = vld [vmem:[%s1228_s4] sm:$0x3] }
  0x5f   :  { %501 = vmatpush2.bf16.msra.mxu0 %v1024_v62  ;;  %v595_v62 = vrot.slane %v590_v61, %v130_v40 }
  0x60   :  { %542 = vmatpush2.bf16.msra.mxu1 %v1025_v63  ;;  %502 = vmatprep.subr.bf16.mxu0 %v1026_v0  ;;  %v599_v63 = vrot.slane %v590_v61, %v134_v42 }
  0x61   :  { %543 = vmatprep.subr.bf16.mxu1 %v1028_v1 }
  0x63   :  { %503 = vmatpush2.bf16.msra.mxu0 %v1030_v2 }
  0x64   :  { %544 = vmatpush2.bf16.msra.mxu1 %v1031_v3  ;;  %762 = vmatprep.subr.bf16.mxu0 %v1038_v4 }
  0x66   :  { %505 = vmatmul.mubr.bf16.vlgmr.msra.gmra.mxu0 %v828_v5 }
  0x67   :  { %546 = vmatmul.mubr.bf16.vlgmr.msra.gmra.mxu1 %v830_v6  ;;  %763 = vmatpush1.bf16.msra.mxu0 %v1036_v7 }
  0x68   :  { %764 = vmatprep.subr.bf16.mxu0 %v1041_v8 }
  0x6b   :  { %765 = vmatpush1.bf16.msra.mxu0 %v1039_v9 }
  0x6c   :  { %766 = vmatprep.subr.bf16.mxu0 %v1044_v10 }
  0x6f   :  { %767 = vmatpush1.bf16.msra.mxu0 %v1042_v11 }
  0x70   :  { %768 = vmatprep.subr.bf16.mxu0 %v1047_v12 }
  0x73   :  { %769 = vmatpush1.bf16.msra.mxu0 %v1045_v13 }
  0x74   :  { %770 = vmatprep.subr.bf16.mxu0 %v1050_v14 }
  0x77   :  { %771 = vmatpush1.bf16.msra.mxu0 %v1048_v15 }
  0x78   :  { %772 = vmatprep.subr.bf16.mxu0 %v1053_v16 }
  0x7b   :  { %773 = vmatpush1.bf16.msra.mxu0 %v1051_v17 }
  0x7c   :  { %774 = vmatprep.subr.bf16.mxu0 %v1056_v18 }
  0x7f   :  { %775 = vmatpush1.bf16.msra.mxu0 %v1054_v19 }
  0x80   :  { %776 = vmatprep.subr.bf16.mxu0 %v1059_v20 }
  0x83   :  { %777 = vmatpush1.bf16.msra.mxu0 %v1057_v21 }
  0x84   :  { %778 = vmatprep.subr.bf16.mxu0 %v1062_v22 }
  0x87   :  { %779 = vmatpush2.bf16.msra.mxu0 %v1060_v23 }
  0x88   :  { %780 = vmatprep.subr.bf16.mxu0 %v1065_v24 }
  0x8b   :  { %781 = vmatpush2.bf16.msra.mxu0 %v1063_v25 }
  0x8c   :  { %782 = vmatprep.subr.bf16.mxu0 %v1068_v26 }
  0x8f   :  { %783 = vmatpush2.bf16.msra.mxu0 %v1066_v27 }
  0x90   :  { %784 = vmatprep.subr.bf16.mxu0 %v1071_v28 }
  0x93   :  { %785 = vmatpush2.bf16.msra.mxu0 %v1069_v29 }
  0x94   :  { %786 = vmatprep.subr.bf16.mxu0 %v1074_v30 }
  0x97   :  { %787 = vmatpush2.bf16.msra.mxu0 %v1072_v31 }
  0x98   :  { %788 = vmatprep.subr.bf16.mxu0 %v1077_v32 }
  0x9b   :  { %789 = vmatpush2.bf16.msra.mxu0 %v1075_v33 }
  0x9c   :  { %790 = vmatprep.subr.bf16.mxu0 %v1080_v34 }
  0x9f   :  { %791 = vmatpush2.bf16.msra.mxu0 %v1078_v35 }
  0xa0   :  { %792 = vmatprep.subr.bf16.mxu0 %v1083_v36 }
  0xa3   :  { %793 = vmatpush2.bf16.msra.mxu0 %v1081_v37 }
 0x126   :  { %v506_v45 = vpop.f32.mrf.mxu0 }
 0x127   :  { %v547_v46 = vpop.f32.mrf.mxu1  ;;  %v507_v47 = vadd.f32 %v506_v45, %v131_v43 }
 0x128   :  { %v508_v48 = vpop.f32.mrf.mxu0 }
 0x129   :  { %v549_v49 = vpop.f32.mrf.mxu1  ;;  %v548_v50 = vadd.f32 %v547_v46, %v507_v47  ;;  %v509_v51 = vadd.f32 %v508_v48, %v135_v44 }
 0x12a   :  { %v510_v52 = vpop.f32.mrf.mxu0 }
 0x12b   :  { %v551_v53 = vpop.f32.mrf.mxu1  ;;  %v550_v54 = vadd.f32 %v549_v49, %v509_v51  ;;  %v554_v55 = vmax.f32 %v548_v50, 0.0 }
 0x12c   :  { %v511_v56 = vpop.f32.mrf.mxu0 }
 0x12d   :  { %v552_v57 = vpop.f32.mrf.mxu1  ;;  %v555_v58 = vmax.f32 %v550_v54, 0.0  ;;  %v556_v60 = vpack.c.bf16 %v554_v55, %v554_v55 }
 0x12f   :  { %v557_v59 = vpack.c.bf16 %v555_v58, %v555_v58 }
 0x131   :  { %794 = vmatprep.mubr.bf16.mxu0 %v557_v59 }
 0x132   :  { %795 = vmatmul.mubr.bf16.vlgmr.msra.gmra.mxu0 %v556_v60 }
 0x1f2   :  { %v796_v0 = vpop.f32.mrf.mxu0 }
 0x1f3   :  { %v797_v2 = vadd.f32 %v796_v0, %v595_v62 }
 0x1f4   :  { %v798_v1 = vpop.f32.mrf.mxu0 }
 0x1f5   :  { %v799_v3 = vadd.f32 %v798_v1, %v599_v63 }
 0x1f6   :  { %v800_v4 = vpop.f32.mrf.mxu0 }
 0x1f7   :  { %v929_v5 = vpack.c.bf16 %v799_v3, %v797_v2 }
 0x1f8   :  { %v801_v6 = vpop.f32.mrf.mxu0 }
 0x1f9   :  { %811 = vst [vmem:[#allocation8] sm:$0xff] %v929_v5 }
 0x1fa   :  { %1155 = shalt.err (!%p1152_p5)
}
 0x1fb   :  { %821 = dma.vmem_to_hbm [thread:$0]  %s819_s11, 128, %s1229_s5, [#allocation4]  }
 0x1fc   :  { %1168 = dma.done.wait [#allocation4], 128  }
 0x1fd   :  { %1169 = vsyncadd [#allocation4], 4294967168 }
 0x1fe   :  { %825 = vsyncpa [#allocation3], 1 }
 0x1ff   :  { %826 = vsyncpa [#allocation6], 1 }
 0x200   :  { %827 = vsyncpa [#allocation4], 1 }

</bundles_post_ra>
